<compile_context>
chip_gen: v7x
topology: tpu7x:2x2x1
jax: 0.10.0
libtpu: 0.0.40
codegen_flags: <defaults>
</compile_context>

<pallas_src>
import functools

import jax
import jax.numpy as jnp
from jax.experimental import pallas as pl
from jax.experimental.pallas import tpu as pltpu

_SQRT_HALF = 0.7071067811865476  # 1 / sqrt(2)


# ----------------------------------------------------------------------------
# Kernels
# ----------------------------------------------------------------------------
def _gelu_f32(h, approximate):
    if approximate:
        # tanh approximation runs on the EUP (frees VALU slots); not bit-exact
        # with torch.nn.GELU() default.
        return jax.nn.gelu(h, approximate=True)
    return 0.5 * h * (1.0 + jax.lax.erf(h * _SQRT_HALF))


def _mlp_kernel_scratch(x_ref, w1_ref, b1_ref, w2_ref, b2_ref, o_ref, acc_ref,
                        *, approximate):
    """Accumulate into a dedicated f32 scratch (for non-f32 output dtypes)."""
    j = pl.program_id(1)

    @pl.when(j == 0)
    def _init():
        acc_ref[...] = jnp.zeros_like(acc_ref)

    h = jnp.dot(x_ref[...], w1_ref[...], preferred_element_type=jnp.float32)
    h = _gelu_f32(h + b1_ref[...].astype(jnp.float32), approximate)
    acc_ref[...] += jnp.dot(h.astype(w2_ref.dtype), w2_ref[...],
                            preferred_element_type=jnp.float32)

    @pl.when(j == pl.num_programs(1) - 1)
    def _finalize():
        o_ref[...] = (acc_ref[...]
                      + b2_ref[...].astype(jnp.float32)).astype(o_ref.dtype)


def _mlp_kernel_inplace(x_ref, w1_ref, b1_ref, w2_ref, b2_ref, o_ref,
                        *, approximate):
    """f32 output: accumulate directly into the resident output block."""
    j = pl.program_id(1)

    @pl.when(j == 0)
    def _init():
        o_ref[...] = jnp.zeros_like(o_ref)

    h = jnp.dot(x_ref[...], w1_ref[...], preferred_element_type=jnp.float32)
    h = _gelu_f32(h + b1_ref[...].astype(jnp.float32), approximate)
    o_ref[...] += jnp.dot(h.astype(w2_ref.dtype), w2_ref[...],
                          preferred_element_type=jnp.float32)

    @pl.when(j == pl.num_programs(1) - 1)
    def _finalize():
        o_ref[...] += b2_ref[...].astype(jnp.float32)


# ----------------------------------------------------------------------------
# Tiling / hardware helpers
# ----------------------------------------------------------------------------
def _round_up(x, m):
    return (x + m - 1) // m * m


@functools.lru_cache(maxsize=1)
def _tpu_caps():
    """Best-effort (per-core VMEM bytes, TensorCores per chip)."""
    vmem = 64 * 1024 * 1024  # conservative default: safe on every generation
    cores = 1
    try:
        info = pltpu.get_tpu_info()
        for name in ("vmem_capacity_bytes", "vmem_bytes", "vmem_size_bytes"):
            v = getattr(info, name, None)
            if v:
                vmem = int(v)
                break
        for name in ("num_cores", "core_count", "tensorcores_per_chip",
                     "num_tensorcores"):
            v = getattr(info, name, None)
            if v:
                cores = int(v)
                break
    except Exception:
        pass
    return vmem, max(cores, 1)


def _choose_tiles(M, Dp, H, w_itemsize, x_itemsize, *, tm_target, th_target,
                  vmem_budget, cores, use_scratch):
    """Pick (tm, th) so the double-buffered VMEM plan fits the budget.

    th is a free multiple of 128 (H is later padded up to a multiple of th).
    Shrink order: th first (down to 128), then tm with a floor of 256, and
    only as a last resort below that.
    """

    def plan_bytes(tm, th):
        x_b = 2 * tm * Dp * x_itemsize        # double-buffered input rows
        o_b = 2 * tm * Dp * x_itemsize        # double-buffered output rows
        w1_b = 2 * Dp * th * w_itemsize       # streamed W1 column tile
        w2_b = 2 * th * Dp * w_itemsize       # streamed W2 row tile
        b_b = 2 * (th + Dp) * w_itemsize      # bias tiles
        acc_b = tm * Dp * 4 if use_scratch else 0
        return x_b + o_b + w1_b + w2_b + b_b + acc_b

    m8 = _round_up(M, 8)
    tm = min(_round_up(tm_target, 8), m8)

    # Megacore balance: if the chip has >= 2 TensorCores and a single row tile
    # would cover all rows, halve tm so both cores get work.
    if cores >= 2 and m8 // tm < 2 <= m8 // 8:
        tm = _round_up((M + 1) // 2, 8)

    th_cap = max(128, min(_round_up(th_target, 128), _round_up(H, 128)))
    tm_floor = min(256, tm)  # floor for shrinking; never grows tm

    def fit_th(tm_):
        th_ = th_cap
        while th_ > 128 and plan_bytes(tm_, th_) > vmem_budget:
            th_ -= 128
        return th_

    th = fit_th(tm)
    while plan_bytes(tm, th) > vmem_budget and tm > tm_floor:
        tm = max(tm_floor, _round_up(tm // 2, 8))
        th = fit_th(tm)
    while plan_bytes(tm, th) > vmem_budget and tm > 8:
        tm = max(8, _round_up(tm // 2, 8))
        th = fit_th(tm)
    if plan_bytes(tm, th) > vmem_budget:
        # TODO(synk): add an output-column (Dp) grid axis for very large D so
        # tm does not have to collapse; not needed for typical mixer dims.
        raise ValueError(
            f"MLP tile plan does not fit VMEM budget ({vmem_budget} bytes) "
            f"even at tm=8, th=128 with Dp={Dp}.")
    return tm, th


# ----------------------------------------------------------------------------
# Public wrapper
# ----------------------------------------------------------------------------
@functools.partial(
    jax.jit,
    static_argnames=("tm_target", "th_target", "approximate_gelu",
                     "compute_dtype"))
def mlp_block(x, w1, b1, w2, b2, *, tm_target=None, th_target=512,
              approximate_gelu=False, compute_dtype=None):
    """y = GELU(x @ W1 + b1) @ W2 + b2 for x: [..., input_dim].

    Weights are stored (in, out), i.e. transposed vs. PyTorch nn.Linear.
    tm_target: row tile; default is generation-aware (512, or 1024 on
      128-MiB-VMEM parts).  Keep it >= 256-512 even on v5e — smaller tiles
      make the kernel weight-DMA-bound.
    th_target: hidden tile cap (multiple of 128).
    approximate_gelu: use tanh GELU (EUP) instead of exact erf.
    compute_dtype: optionally cast x/W1/W2 (e.g. jnp.bfloat16) before the
      kernel; accumulation stays f32 and the output keeps x's dtype.
    """
    orig_shape = x.shape
    out_dtype = jnp.dtype(x.dtype)
    D = orig_shape[-1]
    H = w1.shape[1]
    x2 = x.reshape(-1, D)
    M = x2.shape[0]

    if compute_dtype is not None:
        cd = jnp.dtype(compute_dtype)
        x2 = x2.astype(cd)
        w1 = w1.astype(cd)
        w2 = w2.astype(cd)

    w_itemsize = jnp.dtype(w1.dtype).itemsize
    x_itemsize = jnp.dtype(x2.dtype).itemsize

    vmem_cap, cores = _tpu_caps()
    vmem_budget = int(vmem_cap * 0.70)      # plan budget (double buffers etc.)
    vmem_limit = int(vmem_cap * 0.875)      # explicit scoped-VMEM limit

    if tm_target is None:
        tm_target = 1024 if vmem_cap >= 96 * 1024 * 1024 else 512

    # Lane-dense padding: last dims to multiples of 128 so MXU passes use full
    # lanes and output stores are unmasked.  Zero padding is numerically inert
    # (padded W1 cols / W2 rows / biases are zero => no contribution) and
    # padded M rows are sliced off before return.
    Dp = _round_up(D, 128)
    use_scratch = out_dtype != jnp.float32  # f32 outputs accumulate in-place

    tm, th = _choose_tiles(M, Dp, H, w_itemsize, x_itemsize,
                           tm_target=tm_target, th_target=th_target,
                           vmem_budget=vmem_budget, cores=cores,
                           use_scratch=use_scratch)
    Hp = _round_up(H, th)
    Mp = _round_up(M, tm)

    def _pad2(a, rows, cols):
        pr, pc = rows - a.shape[0], cols - a.shape[1]
        if pr == 0 and pc == 0:
            return a                      # skip copies when already aligned
        return jnp.pad(a, ((0, pr), (0, pc)))

    # TODO(synk): in a full model, pre-pad the weights/biases once at init so
    # only the activation pad sits in the per-call hot path.
    x2p = _pad2(x2, Mp, Dp)
    w1p = _pad2(w1, Dp, Hp)
    b1p = _pad2(b1.reshape(1, H), 1, Hp)
    w2p = _pad2(w2, Hp, Dp)
    b2p = _pad2(b2.reshape(1, D), 1, Dp)

    n_rows = Mp // tm
    n_h = Hp // th

    if use_scratch:
        kernel = functools.partial(_mlp_kernel_scratch,
                                   approximate=approximate_gelu)
        scratch_shapes = [pltpu.VMEM((tm, Dp), jnp.float32)]
    else:
        kernel = functools.partial(_mlp_kernel_inplace,
                                   approximate=approximate_gelu)
        scratch_shapes = []

    cost = pl.CostEstimate(
        flops=4 * Mp * Dp * Hp,                 # two matmuls: 2*M*D*H each
        transcendentals=Mp * Hp,                # erf/tanh per hidden element
        bytes_accessed=(x2p.size + Mp * Dp) * x_itemsize
        + n_rows * (w1p.size + w2p.size + b1p.size + b2p.size) * w_itemsize,
    )

    out = pl.pallas_call(
        kernel,
        out_shape=jax.ShapeDtypeStruct((Mp, Dp), out_dtype),
        grid_spec=pltpu.PrefetchScalarGridSpec(
            num_scalar_prefetch=0,
            grid=(n_rows, n_h),  # reduction (hidden) axis last
            in_specs=[
                pl.BlockSpec((tm, Dp), lambda i, j: (i, 0)),   # x rows (resident over j)
                pl.BlockSpec((Dp, th), lambda i, j: (0, j)),   # W1 column tile (streamed)
                pl.BlockSpec((1, th), lambda i, j: (0, j)),    # b1 tile
                pl.BlockSpec((th, Dp), lambda i, j: (j, 0)),   # W2 row tile (streamed)
                pl.BlockSpec((1, Dp), lambda i, j: (0, 0)),    # b2 (constant block)
            ],
            out_specs=pl.BlockSpec((tm, Dp), lambda i, j: (i, 0)),
            scratch_shapes=scratch_shapes,
        ),
        compiler_params=pltpu.CompilerParams(
            dimension_semantics=("parallel", "arbitrary"),
            vmem_limit_bytes=vmem_limit,
        ),
        cost_estimate=cost,
    )(x2p, w1p, b1p, w2p, b2p)

    out = out[:M, :D]
    return out.reshape(orig_shape)


def init_mlp_params(key, input_dim, hidden_dim, dtype=jnp.float32):
    """Deterministic init mimicking nn.Linear's uniform(-1/sqrt(fan_in), ...)."""
    k1, k2, k3, k4 = jax.random.split(key, 4)
    bound1 = 1.0 / (float(input_dim) ** 0.5)
    bound2 = 1.0 / (float(hidden_dim) ** 0.5)
    # Stored as (in, out) so the kernel computes x @ W directly.
    w1 = jax.random.uniform(k1, (input_dim, hidden_dim), dtype, -bound1, bound1)
    b1 = jax.random.uniform(k2, (hidden_dim,), dtype, -bound1, bound1)
    w2 = jax.random.uniform(k3, (hidden_dim, input_dim), dtype, -bound2, bound2)
    b2 = jax.random.uniform(k4, (input_dim,), dtype, -bound2, bound2)
    return w1, b1, w2, b2


if __name__ == "__main__":
    key = jax.random.PRNGKey(0)
    kx, kp = jax.random.split(key)

    batch, seq, input_dim, hidden_dim = 2, 8, 32, 64
    x = jax.random.normal(kx, (batch, seq, input_dim), jnp.float32)
    w1, b1, w2, b2 = init_mlp_params(kp, input_dim, hidden_dim)

    y = mlp_block(x, w1, b1, w2, b2)
    y = jax.block_until_ready(y)

    # Pure-JAX reference (same math outside Pallas).
    h_ref = x @ w1 + b1
    h_ref = 0.5 * h_ref * (1.0 + jax.lax.erf(h_ref / jnp.sqrt(2.0)))
    y_ref = h_ref @ w2 + b2
    assert y.shape == x.shape
    assert jnp.allclose(y, y_ref, atol=2e-5, rtol=2e-5), "mismatch vs reference"

    print("KERNEL_OK")
</pallas_src>

<mosaic_0001>
module attributes {stable_mosaic.version = 11 : i64} {
  func.func @_mlp_kernel_inplace(%arg0: i32, %arg1: i32, %arg2: memref<16x128xf32, #tpu.memory_space<vmem>>, %arg3: memref<128x128xf32, #tpu.memory_space<vmem>>, %arg4: memref<1x128xf32, #tpu.memory_space<vmem>>, %arg5: memref<128x128xf32, #tpu.memory_space<vmem>>, %arg6: memref<1x128xf32, #tpu.memory_space<vmem>>, %arg7: memref<16x128xf32, #tpu.memory_space<vmem>>) attributes {dimension_semantics = [#tpu.dimension_semantics<parallel>, #tpu.dimension_semantics<arbitrary>], iteration_bounds = array<i64: 1, 1>, scalar_prefetch = 0 : i64, scratch_operands = 0 : i64, tpu.core_type = #tpu.core_type<tc>, window_params = [{transform_indices = @transform_0, window_bounds = array<i64: 16, 128>}, {transform_indices = @transform_1, window_bounds = array<i64: 128, 128>}, {transform_indices = @transform_2, window_bounds = array<i64: 1, 128>}, {transform_indices = @transform_3, window_bounds = array<i64: 128, 128>}, {pipeline_mode = #tpu.pipeline_mode<synchronous>, transform_indices = @transform_4, window_bounds = array<i64: 1, 128>}, {transform_indices = @transform_5, window_bounds = array<i64: 16, 128>}]} {
    %c0_i32 = arith.constant 0 : i32
    %0 = arith.cmpi eq, %arg1, %c0_i32 : i32
    %1 = arith.extui %0 : i1 to i32
    %c0_i32_0 = arith.constant 0 : i32
    %2 = arith.cmpi ne, %1, %c0_i32_0 : i32
    scf.if %2 {
      %cst_18 = arith.constant 0.000000e+00 : f32
      %25 = vector.broadcast %cst_18 : f32 to vector<16x128xf32>
      %c0_19 = arith.constant 0 : index
      %c0_20 = arith.constant 0 : index
      %26 = vector.load %arg7[%c0_19, %c0_20] : memref<16x128xf32, #tpu.memory_space<vmem>>, vector<16x128xf32>
      tpu.vector_store %arg7[%c0_19, %c0_20], %25 {strides = array<i32>} : memref<16x128xf32, #tpu.memory_space<vmem>>, vector<16x128xf32>,
    } else {
    }
    %c0 = arith.constant 0 : index
    %c0_1 = arith.constant 0 : index
    %3 = vector.load %arg2[%c0, %c0_1] : memref<16x128xf32, #tpu.memory_space<vmem>>, vector<16x128xf32>
    %c0_2 = arith.constant 0 : index
    %c0_3 = arith.constant 0 : index
    %4 = vector.load %arg3[%c0_2, %c0_3] : memref<128x128xf32, #tpu.memory_space<vmem>>, vector<128x128xf32>
    %cst = arith.constant dense<0.000000e+00> : vector<16x128xf32>
    %5 = tpu.matmul %3, %4, %cst {dimension_numbers = #tpu.dot_dimension_numbers<[1], [0], [0], [1], [0, 0, 1, 1], [], []>} : vector<16x128xf32>, vector<128x128xf32>, vector<16x128xf32> -> vector<16x128xf32>
    %c0_4 = arith.constant 0 : index
    %c0_5 = arith.constant 0 : index
    %6 = vector.load %arg4[%c0_4, %c0_5] : memref<1x128xf32, #tpu.memory_space<vmem>>, vector<1x128xf32>
    %7 = vector.broadcast %6 : vector<1x128xf32> to vector<16x128xf32>
    %8 = arith.addf %5, %7 : vector<16x128xf32>
    %cst_6 = arith.constant 5.000000e-01 : f32
    %9 = vector.broadcast %cst_6 : f32 to vector<16x128xf32>
    %10 = arith.mulf %9, %8 : vector<16x128xf32>
    %cst_7 = arith.constant 0.707106769 : f32
    %11 = vector.broadcast %cst_7 : f32 to vector<16x128xf32>
    %12 = arith.mulf %8, %11 : vector<16x128xf32>
    %13 = math.erf %12 : vector<16x128xf32>
    %cst_8 = arith.constant 1.000000e+00 : f32
    %14 = vector.broadcast %cst_8 : f32 to vector<16x128xf32>
    %15 = arith.addf %14, %13 : vector<16x128xf32>
    %16 = arith.mulf %10, %15 : vector<16x128xf32>
    %c0_9 = arith.constant 0 : index
    %c0_10 = arith.constant 0 : index
    %17 = vector.load %arg7[%c0_9, %c0_10] : memref<16x128xf32, #tpu.memory_space<vmem>>, vector<16x128xf32>
    %c0_11 = arith.constant 0 : index
    %c0_12 = arith.constant 0 : index
    %18 = vector.load %arg5[%c0_11, %c0_12] : memref<128x128xf32, #tpu.memory_space<vmem>>, vector<128x128xf32>
    %cst_13 = arith.constant dense<0.000000e+00> : vector<16x128xf32>
    %19 = tpu.matmul %16, %18, %cst_13 {dimension_numbers = #tpu.dot_dimension_numbers<[1], [0], [0], [1], [0, 0, 1, 1], [], []>} : vector<16x128xf32>, vector<128x128xf32>, vector<16x128xf32> -> vector<16x128xf32>
    %20 = arith.addf %17, %19 : vector<16x128xf32>
    %c0_14 = arith.constant 0 : index
    %c0_15 = arith.constant 0 : index
    %21 = vector.load %arg7[%c0_14, %c0_15] : memref<16x128xf32, #tpu.memory_space<vmem>>, vector<16x128xf32>
    tpu.vector_store %arg7[%c0_14, %c0_15], %20 {strides = array<i32>} : memref<16x128xf32, #tpu.memory_space<vmem>>, vector<16x128xf32>,
    %c0_i32_16 = arith.constant 0 : i32
    %22 = arith.cmpi eq, %arg1, %c0_i32_16 : i32
    %23 = arith.extui %22 : i1 to i32
    %c0_i32_17 = arith.constant 0 : i32
    %24 = arith.cmpi ne, %23, %c0_i32_17 : i32
    scf.if %24 {
      %c0_18 = arith.constant 0 : index
      %c0_19 = arith.constant 0 : index
      %25 = vector.load %arg7[%c0_18, %c0_19] : memref<16x128xf32, #tpu.memory_space<vmem>>, vector<16x128xf32>
      %c0_20 = arith.constant 0 : index
      %c0_21 = arith.constant 0 : index
      %26 = vector.load %arg6[%c0_20, %c0_21] : memref<1x128xf32, #tpu.memory_space<vmem>>, vector<1x128xf32>
      %27 = vector.broadcast %26 : vector<1x128xf32> to vector<16x128xf32>
      %28 = arith.addf %25, %27 : vector<16x128xf32>
      %c0_22 = arith.constant 0 : index
      %c0_23 = arith.constant 0 : index
      %29 = vector.load %arg7[%c0_22, %c0_23] : memref<16x128xf32, #tpu.memory_space<vmem>>, vector<16x128xf32>
      tpu.vector_store %arg7[%c0_22, %c0_23], %28 {strides = array<i32>} : memref<16x128xf32, #tpu.memory_space<vmem>>, vector<16x128xf32>,
    } else {
    }
    return
  }
  func.func @transform_0(%arg0: i32, %arg1: i32) -> (i32, i32) {
    %c0_i32 = arith.constant 0 : i32
    %c0_i32_0 = arith.constant 0 : i32
    return %arg0, %c0_i32 : i32, i32
  }
  func.func @transform_1(%arg0: i32, %arg1: i32) -> (i32, i32) {
    %c0_i32 = arith.constant 0 : i32
    %c0_i32_0 = arith.constant 0 : i32
    return %c0_i32, %arg1 : i32, i32
  }
  func.func @transform_2(%arg0: i32, %arg1: i32) -> (i32, i32) {
    %c0_i32 = arith.constant 0 : i32
    %c0_i32_0 = arith.constant 0 : i32
    return %c0_i32, %arg1 : i32, i32
  }
  func.func @transform_3(%arg0: i32, %arg1: i32) -> (i32, i32) {
    %c0_i32 = arith.constant 0 : i32
    %c0_i32_0 = arith.constant 0 : i32
    return %arg1, %c0_i32 : i32, i32
  }
  func.func @transform_4(%arg0: i32, %arg1: i32) -> (i32, i32) {
    %c0_i32 = arith.constant 0 : i32
    %c0_i32_0 = arith.constant 0 : i32
    %c0_i32_1 = arith.constant 0 : i32
    return %c0_i32, %c0_i32_0 : i32, i32
  }
  func.func @transform_5(%arg0: i32, %arg1: i32) -> (i32, i32) {
    %c0_i32 = arith.constant 0 : i32
    %c0_i32_0 = arith.constant 0 : i32
    return %arg0, %c0_i32 : i32, i32
  }
}

</mosaic_0001>

<bundles_post_ra>
// kernel: mlp_block.1
= control target key start
LH: loop header
LB: loop body
LE: loop exit
PB: predicated region body
PF: predicated region fallthrough
CT: control target
= control target key end

     0   :  { %s574_s1 = inlined_call_operand.vmem [shape: f32[128,128], index: 1, kind: input, shape index: {}]   ;;  %s575_s0 = inlined_call_operand.vmem [shape: f32[16,128], index: 0, kind: input, shape index: {}]   ;;  %s576_s3 = inlined_call_operand.vmem [shape: f32[128,128], index: 3, kind: input, shape index: {}]   ;;  %s577_s2 = inlined_call_operand.vmem [shape: f32[1,128], index: 2, kind: input, shape index: {}]   ;;  %s578_s4 = inlined_call_operand.vmem [shape: f32[1,128], index: 4, kind: input, shape index: {}]   ;;  %s579_s5 = inlined_call_operand.vmem [shape: f32[16,128], index: 5, kind: output, shape index: {}]  }
   0x1   :  { %v28_v0 = vld [vmem:[%s574_s1] sm:$0xff]  ;;  %v29_v1 = vld [vmem:[%s574_s1 + $0x8] sm:$0xff]  ;;  %v30_v2 = vld [vmem:[%s574_s1 + $0x10] sm:$0xff] }
   0x2   :  { %v361_v3 = vpack.c.bf16 %v29_v1, %v28_v0  ;;  %v31_v4 = vld [vmem:[%s574_s1 + $0x18] sm:$0xff]  ;;  %v32_v6 = vld [vmem:[%s574_s1 + $0x20] sm:$0xff]  ;;  %v33_v7 = vld [vmem:[%s574_s1 + $0x28] sm:$0xff] }
   0x3   :  { %v365_v5 = vpack.c.bf16 %v31_v4, %v30_v2  ;;  %v369_v8 = vpack.c.bf16 %v33_v7, %v32_v6  ;;  %v34_v9 = vld [vmem:[%s574_s1 + $0x30] sm:$0xff]  ;;  %v35_v10 = vld [vmem:[%s574_s1 + $0x38] sm:$0xff]  ;;  %v26_v11 = vld [vmem:[%s575_s0] sm:$0xff] }
   0x4   :  { %362 = vmatprep.subr.bf16.mxu0 %v361_v3  ;;  %323 = vmatprep.mubr.f32.mxu0 %v26_v11  ;;  %v138_v12 = vld [vmem:[%s576_s3] sm:$0xff]  ;;  %v139_v13 = vld [vmem:[%s576_s3 + $0x8] sm:$0xff]  ;;  %v140_v14 = vld [vmem:[%s576_s3 + $0x10] sm:$0xff]  ;;  %v373_v20 = vpack.c.bf16 %v35_v10, %v34_v9 }
   0x5   :  { %364 = vmatpush3.bf16.msra.mxu0 %v361_v3  ;;  %v393_v15 = vpack.c.bf16 %v139_v13, %v138_v12  ;;  %v141_v16 = vld [vmem:[%s576_s3 + $0x18] sm:$0xff]  ;;  %v142_v18 = vld [vmem:[%s576_s3 + $0x20] sm:$0xff]  ;;  %v143_v19 = vld [vmem:[%s576_s3 + $0x28] sm:$0xff] }
   0x6   :  { %366 = vmatprep.subr.bf16.mxu0 %v365_v5  ;;  %v397_v17 = vpack.c.bf16 %v141_v16, %v140_v14  ;;  %v36_v21 = vld [vmem:[%s574_s1 + $0x40] sm:$0xff]  ;;  %v37_v22 = vld [vmem:[%s574_s1 + $0x48] sm:$0xff]  ;;  %v401_v23 = vpack.c.bf16 %v143_v19, %v142_v18  ;;  %v38_v25 = vld [vmem:[%s574_s1 + $0x50] sm:$0xff] }
   0x7   :  { %394 = vmatprep.subr.bf16.mxu1 %v393_v15  ;;  %v377_v24 = vpack.c.bf16 %v37_v22, %v36_v21  ;;  %v39_v26 = vld [vmem:[%s574_s1 + $0x58] sm:$0xff]  ;;  %v40_v28 = vld [vmem:[%s574_s1 + $0x60] sm:$0xff]  ;;  %v41_v29 = vld [vmem:[%s574_s1 + $0x68] sm:$0xff] }
   0x8   :  { %396 = vmatpush3.bf16.msra.mxu1 %v393_v15  ;;  %v381_v27 = vpack.c.bf16 %v39_v26, %v38_v25  ;;  %v385_v30 = vpack.c.bf16 %v41_v29, %v40_v28  ;;  %v42_v31 = vld [vmem:[%s574_s1 + $0x70] sm:$0xff]  ;;  %v43_v32 = vld [vmem:[%s574_s1 + $0x78] sm:$0xff]  ;;  %v27_v34 = vld [vmem:[%s575_s0 + $0x8] sm:$0xff] }
   0x9   :  { %368 = vmatpush3.bf16.msra.mxu0 %v365_v5  ;;  %398 = vmatprep.subr.bf16.mxu1 %v397_v17  ;;  %v389_v33 = vpack.c.bf16 %v43_v32, %v42_v31  ;;  %v144_v35 = vld [vmem:[%s576_s3 + $0x30] sm:$0xff]  ;;  %v145_v36 = vld [vmem:[%s576_s3 + $0x38] sm:$0xff]  ;;  %v146_v38 = vld [vmem:[%s576_s3 + $0x40] sm:$0xff] }
   0xa   :  { %370 = vmatprep.subr.bf16.mxu0 %v369_v8  ;;  %v405_v37 = vpack.c.bf16 %v145_v36, %v144_v35  ;;  %v147_v39 = vld [vmem:[%s576_s3 + $0x48] sm:$0xff]  ;;  %v148_v41 = vld [vmem:[%s576_s3 + $0x50] sm:$0xff]  ;;  %v149_v42 = vld [vmem:[%s576_s3 + $0x58] sm:$0xff] }
   0xb   :  { %v409_v40 = vpack.c.bf16 %v147_v39, %v146_v38  ;;  %v413_v43 = vpack.c.bf16 %v149_v42, %v148_v41  ;;  %v150_v44 = vld [vmem:[%s576_s3 + $0x60] sm:$0xff]  ;;  %v151_v45 = vld [vmem:[%s576_s3 + $0x68] sm:$0xff]  ;;  %v152_v47 = vld [vmem:[%s576_s3 + $0x70] sm:$0xff] }
   0xc   :  { %400 = vmatpush3.bf16.msra.mxu1 %v397_v17  ;;  %v417_v46 = vpack.c.bf16 %v151_v45, %v150_v44  ;;  %v153_v48 = vld [vmem:[%s576_s3 + $0x78] sm:$0xff]  ;;  %v253_v50 = vld [vmem:[%s577_s2] ss:$0 sm:$0xff] }
   0xd   :  { %372 = vmatpush3.bf16.msra.mxu0 %v369_v8  ;;  %402 = vmatprep.subr.bf16.mxu1 %v401_v23  ;;  %v421_v49 = vpack.c.bf16 %v153_v48, %v152_v47  ;;  %v254_v2 = vld [vmem:[%s578_s4] ss:$0 sm:$0xff] }
   0xe   :  { %374 = vmatprep.subr.bf16.mxu0 %v373_v20 }
  0x10   :  { %404 = vmatpush3.bf16.msra.mxu1 %v401_v23 }
  0x11   :  { %376 = vmatpush3.bf16.msra.mxu0 %v373_v20  ;;  %406 = vmatprep.subr.bf16.mxu1 %v405_v37 }
  0x12   :  { %378 = vmatprep.subr.bf16.mxu0 %v377_v24 }
  0x14   :  { %408 = vmatpush3.bf16.msra.mxu1 %v405_v37 }
  0x15   :  { %380 = vmatpush3.bf16.msra.mxu0 %v377_v24  ;;  %410 = vmatprep.subr.bf16.mxu1 %v409_v40 }
  0x16   :  { %382 = vmatprep.subr.bf16.mxu0 %v381_v27 }
  0x18   :  { %412 = vmatpush3.bf16.msra.mxu1 %v409_v40 }
  0x19   :  { %384 = vmatpush3.bf16.msra.mxu0 %v381_v27  ;;  %414 = vmatprep.subr.bf16.mxu1 %v413_v43 }
  0x1a   :  { %386 = vmatprep.subr.bf16.mxu0 %v385_v30 }
  0x1c   :  { %416 = vmatpush3.bf16.msra.mxu1 %v413_v43 }
  0x1d   :  { %388 = vmatpush3.bf16.msra.mxu0 %v385_v30  ;;  %418 = vmatprep.subr.bf16.mxu1 %v417_v46 }
  0x1e   :  { %390 = vmatprep.subr.bf16.mxu0 %v389_v33 }
  0x20   :  { %420 = vmatpush3.bf16.msra.mxu1 %v417_v46 }
  0x21   :  { %392 = vmatpush3.bf16.msra.mxu0 %v389_v33  ;;  %422 = vmatprep.subr.bf16.mxu1 %v421_v49 }
  0x24   :  { %324 = vmatmul.mubr.f32.vlgmr.msra.gmra.mrb[0].mxu0 %v27_v34  ;;  %424 = vmatpush3.bf16.msra.mxu1 %v421_v49 }
  0xf7   :  { %v325_v51 = vpop.f32.mrb[0].mxu0 }
  0xf8   :  { %v123_v52 = vadd.f32 %v325_v51, %v253_v50  ;;  %v117_v53 = vpop.f32.mrb[1].mxu0 }
  0xf9   :  { %v118_v54 = vadd.f32 %v253_v50, %v117_v53 }
  0xfa   :  { %v129_v55 = vmul.f32 0.70710677, %v123_v52  ;;  %v127_v62 = vmul.f32 0.5, %v123_v52 }
  0xfb   :  { %v128_v56 = vmul.f32 0.70710677, %v118_v54  ;;  %v126_v60 = vmul.f32 0.5, %v118_v54 }
  0xfc   :  { %426 = verf.f32 %v129_v55 }
  0xfd   :  { %428 = verf.f32 %v128_v56 }
 0x106   :  { %v427_v57 = vpop.eup %426 }
 0x107   :  { %v429_v58 = vpop.eup %428  ;;  %v133_v59 = vadd.f32 1.0, %v427_v57 }
 0x108   :  { %v132_v61 = vadd.f32 1.0, %v429_v58 }
 0x109   :  { %v135_v0 = vmul.f32 %v133_v59, %v127_v62 }
 0x10a   :  { %v134_v63 = vmul.f32 %v132_v61, %v126_v60 }
 0x10c   :  { %358 = vmatprep.mubr.f32.mxu1 %v134_v63 }
 0x10d   :  { %359 = vmatmul.mubr.f32.vlgmr.msra.gmra.mrb[0].mxu1 %v135_v0 }
 0x1e0   :  { %v360_v1 = vpop.f32.mrb[0].mxu1 }
 0x1e1   :  { %v220_v3 = vpop.f32.mrb[1].mxu1  ;;  %v246_v4 = vadd.f32 %v360_v1, %v254_v2 }
 0x1e2   :  { %v245_v5 = vadd.f32 %v254_v2, %v220_v3 }
 0x1e3   :  { %248 = vst [vmem:[%s579_s5 + $0x8] sm:$0xff] %v246_v4 }
 0x1e4   :  { %247 = vst [vmem:[%s579_s5] sm:$0xff] %v245_v5 }

</bundles_post_ra>
